<compile_context>
chip_gen: v7x
topology: tpu7x:2x2x1
jax: 0.10.0
libtpu: 0.0.40
codegen_flags: <defaults>
</compile_context>

<pallas_src>
import jax
import jax.numpy as jnp
from jax.experimental import pallas as pl
from jax.experimental.pallas import tpu as pltpu


def _augment_kernel(x_ref, y_ref, o_ref):
    # x_ref: (b_tile, C, s_tile)      image channels, lane-dense spatial chunk
    # y_ref: (b_tile, Y, 1)           per-sample keypoint vectors
    # o_ref: (b_tile, C + Y, s_tile)  output chunk
    b, _, s = x_ref.shape
    y_dim = y_ref.shape[1]

    x_blk = x_ref[...].astype(o_ref.dtype)
    # (b, Y, 1) -> (b, Y, s): per-sample lane splat (cheap VPU copy, no
    # cross-lane relayout).
    y_blk = jnp.broadcast_to(y_ref[...], (b, y_dim, s)).astype(o_ref.dtype)

    # Build the whole (C+Y)-channel block in-register and issue a single
    # aligned, unmasked full-tile store -- the write path is ~98% of this
    # kernel's work.
    o_ref[...] = jnp.concatenate([x_blk, y_blk], axis=1)


def _round_up(a: int, m: int) -> int:
    return pl.cdiv(a, m) * m


def _target_block_bytes() -> int:
    """Per-step output-block byte target, sized per TPU generation."""
    try:
        kind = jax.devices()[0].device_kind.lower()
    except Exception:
        kind = ""
    # v5-class (16 MiB scoped-VMEM default): stay at ~4 MiB blocks.
    if any(v in kind for v in ("v2", "v3", "v4", "v5")):
        return 4 << 20
    # v6e / v7x: ~8 MiB blocks amortize the ~0.35 us per-step overhead.
    return 8 << 20


def _pick_tiles(bs: int, s: int, out_c: int, itemsize: int,
                target_bytes: int) -> tuple[int, int]:
    lane_bytes = out_c * itemsize            # output bytes per (sample, lane)
    s_pad = _round_up(s, 128)

    # Largest multiple-of-128 spatial tile within the per-sample budget.
    s_tile = min(s_pad, max(128, (target_bytes // lane_bytes) // 128 * 128))
    # Fill the remaining budget with whole batch samples (keeps blocks
    # MiB-scale even when h*w is tiny).
    b_tile = max(1, min(bs, target_bytes // (s_tile * lane_bytes)))

    # Keep at least 2 grid steps so v7x megacore can use both TensorCores.
    if pl.cdiv(bs, b_tile) * pl.cdiv(s, s_tile) < 2:
        if bs >= 2:
            b_tile = pl.cdiv(bs, 2)
        elif s_pad >= 256:
            s_tile = _round_up(pl.cdiv(s, 2), 128)
    return b_tile, s_tile


def _padded_vmem_bytes(shape, itemsize: int) -> int:
    """Conservative VMEM footprint of one buffer of `shape` (8x128 tiling)."""
    *lead, sub, lane = shape
    n = 1
    for d in lead:
        n *= d
    return n * _round_up(sub, 8) * _round_up(lane, 128) * itemsize


def augment(x: jax.Array, y: jax.Array) -> jax.Array:
    """Equivalent of Augment.forward(x, y)."""
    bs, c, h, w = x.shape
    y_dim = y.shape[1]
    out_c = c + y_dim
    s = h * w

    out_dtype = jnp.result_type(x.dtype, y.dtype)
    itemsize = jnp.dtype(out_dtype).itemsize

    # Lane-dense layouts for the kernel (contiguous reshapes, effectively free).
    x2 = x.reshape(bs, c, s)
    y3 = y.reshape(bs, y_dim, 1)

    b_tile, s_tile = _pick_tiles(bs, s, out_c, itemsize, _target_block_bytes())
    grid = (pl.cdiv(bs, b_tile), pl.cdiv(s, s_tile))

    # Double-buffered VMEM footprint (+2 MiB slack), clamped to a range that is
    # safe on every generation (<= 32 MiB, under v7x's 64 MiB physical per TC).
    vmem_bytes = 2 * (
        _padded_vmem_bytes((b_tile, out_c, s_tile), itemsize)
        + _padded_vmem_bytes((b_tile, c, s_tile), jnp.dtype(x.dtype).itemsize)
        + _padded_vmem_bytes((b_tile, y_dim, 1), jnp.dtype(y.dtype).itemsize)
    ) + (2 << 20)
    vmem_limit = min(32 << 20, max(16 << 20, vmem_bytes))

    out = pl.pallas_call(
        _augment_kernel,
        out_shape=jax.ShapeDtypeStruct((bs, out_c, s), out_dtype),
        grid_spec=pl.GridSpec(
            grid=grid,
            in_specs=[
                pl.BlockSpec((b_tile, c, s_tile), lambda bi, si: (bi, 0, si)),
                pl.BlockSpec((b_tile, y_dim, 1), lambda bi, si: (bi, 0, 0)),
            ],
            out_specs=pl.BlockSpec((b_tile, out_c, s_tile),
                                   lambda bi, si: (bi, 0, si)),
        ),
        compiler_params=pltpu.CompilerParams(
            dimension_semantics=("parallel", "parallel"),
            vmem_limit_bytes=vmem_limit,
        ),
    )(x2, y3)

    return out.reshape(bs, out_c, h, w)


def _reference(x, y):
    # Pure-JAX reference mirroring the PyTorch code.
    bs, c, h, w = x.shape
    out_dtype = jnp.result_type(x.dtype, y.dtype)
    y_img = jnp.broadcast_to(y[:, :, None, None], (bs, y.shape[1], h, w))
    return jnp.concatenate([x.astype(out_dtype), y_img.astype(out_dtype)], axis=1)


if __name__ == "__main__":
    key = jax.random.PRNGKey(0)
    kx, ky = jax.random.split(key)

    bs, c, h, w = 2, 3, 16, 16       # image: (bs, 3, h, w)
    y_dim = 68 * 2                   # 136 keypoint coords per sample

    x = jax.random.normal(kx, (bs, c, h, w), dtype=jnp.float32)
    y = jax.random.normal(ky, (bs, y_dim), dtype=jnp.float32)

    out = augment(x, y)
    out = jax.block_until_ready(out)

    ref = _reference(x, y)
    assert out.shape == (bs, c + y_dim, h, w), out.shape
    assert out.dtype == ref.dtype, (out.dtype, ref.dtype)
    assert jnp.allclose(out, ref), "mismatch vs reference"

    print("KERNEL_OK")
</pallas_src>

<mosaic_0001>
module attributes {stable_mosaic.version = 11 : i64} {
  func.func @_augment_kernel(%arg0: i32, %arg1: i32, %arg2: memref<1x3x256xf32, #tpu.memory_space<vmem>>, %arg3: memref<1x136x1xf32, #tpu.memory_space<vmem>>, %arg4: memref<1x139x256xf32, #tpu.memory_space<vmem>>) attributes {dimension_semantics = [#tpu.dimension_semantics<parallel>, #tpu.dimension_semantics<parallel>], iteration_bounds = array<i64: 2, 1>, scalar_prefetch = 0 : i64, scratch_operands = 0 : i64, tpu.core_type = #tpu.core_type<tc>, window_params = [{transform_indices = @transform_0, window_bounds = array<i64: 1, 3, 256>}, {transform_indices = @transform_1, window_bounds = array<i64: 1, 136, 1>}, {transform_indices = @transform_2, window_bounds = array<i64: 1, 139, 256>}]} {
    %c0 = arith.constant 0 : index
    %c0_0 = arith.constant 0 : index
    %c0_1 = arith.constant 0 : index
    %0 = vector.load %arg2[%c0, %c0_0, %c0_1] : memref<1x3x256xf32, #tpu.memory_space<vmem>>, vector<1x3x256xf32>
    %c0_2 = arith.constant 0 : index
    %c0_3 = arith.constant 0 : index
    %c0_4 = arith.constant 0 : index
    %1 = vector.load %arg3[%c0_2, %c0_3, %c0_4] : memref<1x136x1xf32, #tpu.memory_space<vmem>>, vector<1x136x1xf32>
    %2 = vector.shape_cast %1 : vector<1x136x1xf32> to vector<1x136x1xf32>
    %3 = vector.broadcast %2 : vector<1x136x1xf32> to vector<1x136x256xf32>
    %4 = tpu.concatenate %0, %3 in 1 : vector<1x3x256xf32>, vector<1x136x256xf32> -> vector<1x139x256xf32>
    %c0_5 = arith.constant 0 : index
    %c0_6 = arith.constant 0 : index
    %c0_7 = arith.constant 0 : index
    %5 = vector.load %arg4[%c0_5, %c0_6, %c0_7] : memref<1x139x256xf32, #tpu.memory_space<vmem>>, vector<1x139x256xf32>
    tpu.vector_store %arg4[%c0_5, %c0_6, %c0_7], %4 {strides = array<i32>} : memref<1x139x256xf32, #tpu.memory_space<vmem>>, vector<1x139x256xf32>,
    return
  }
  func.func @transform_0(%arg0: i32, %arg1: i32) -> (i32, i32, i32) {
    %c0_i32 = arith.constant 0 : i32
    %c0_i32_0 = arith.constant 0 : i32
    return %arg0, %c0_i32, %arg1 : i32, i32, i32
  }
  func.func @transform_1(%arg0: i32, %arg1: i32) -> (i32, i32, i32) {
    %c0_i32 = arith.constant 0 : i32
    %c0_i32_0 = arith.constant 0 : i32
    %c0_i32_1 = arith.constant 0 : i32
    return %arg0, %c0_i32, %c0_i32_0 : i32, i32, i32
  }
  func.func @transform_2(%arg0: i32, %arg1: i32) -> (i32, i32, i32) {
    %c0_i32 = arith.constant 0 : i32
    %c0_i32_0 = arith.constant 0 : i32
    return %arg0, %c0_i32, %arg1 : i32, i32, i32
  }
}

</mosaic_0001>

<bundles_post_ra>
// kernel: tpu_custom_call.1
= control target key start
LH: loop header
LB: loop body
LE: loop exit
PB: predicated region body
PF: predicated region fallthrough
CT: control target
= control target key end

     0   :  { %s563_s9 = smov 0   ;;  %s565_s10 = smov 0   ;;  %s679_s0 = inlined_call_operand.vmem [shape: f32[2,3,256], index: 0, kind: input, shape index: {}]   ;;  %s680_s1 = inlined_call_operand.vmem [shape: f32[2,136,1], index: 1, kind: input, shape index: {}]   ;;  %s681_s2 = inlined_call_operand.vmem [shape: f32[2,139,256], index: 2, kind: output, shape index: {}]  }
   0x1   :  { %s567_s11 = smov 0  }
   0x2 LB: > { %s24_s12 = sadd.s32 1, %s541_s10  ;;  %p485_p0 = scmp.ge.s32.totalorder %s545_s11, 1  ;;  %s545_s11 = sphi %s567_s11, %s12_s11   ;;  %s541_s10 = sphi %s565_s10, %s683_s10   ;;  %s537_s9 = sphi %s563_s9, %s682_s9  }
   0x3   : > { %p26_p1 = scmp.ge.s32.totalorder %s24_s12, 2  ;;  %p143_p2 = scmp.lt.s32.totalorder %s545_s11, 3 }
   0x5   : > { %s685_s12 = smov (%p26_p1, %s24_s12), 0  ;;  %p144_p3 = pnand %p485_p0, %p143_p2 }
   0x6   : > { %p179_p4 = scmp.lt.s32.totalorder (!%p144_p3), %s537_s9, 1  ;;  %v547_v0 = vmov (!%p144_p3), 0   ;;  %vm292_vm0 = vcmask (!%p144_p3), 1042432  }
   0x7   : > { %147 = sbr.rel (%p144_p3) target bundleno = 183 (0xb7), region = 28  ;;  %521 = vset.pattern.permute.xlu1 (!%p144_p3), %v547_v0  ;;  %520 = vset.pattern.permute.xlu0 (!%p144_p3), %v547_v0 }
   0xe   : > { %s687_s9 = smov (!%p179_p4, %s537_s9), 1 }
   0xf   : > { %s493_s13 = smul.u32 136, %s687_s9  ;;  %s492_s17 = sshll.u32 %s687_s9, 3 }
  0x10   : > { %s186_s20 = scalar_lea.vmem %s679_s0, %s492_s17  ;;  %s494_s21 = smul.u32 288, %s687_s9 }
  0x11   : > { %s587_s16 = scalar_lea.vmem %s680_s1, %s493_s13  ;;  %v203_v18 = vld [vmem:[%s186_s20] sm:$0x77] }
  0x12   : > { %v206_v1 = vld [vmem:[%s587_s16 + $0x10] sm:$0xff]  ;;  %v204_v2 = vld [vmem:[%s587_s16] sm:$0xff]  ;;  %v207_v3 = vld [vmem:[%s587_s16 + $0x18] sm:$0xff]  ;;  %v290_v19 = vcombine.high %v203_v18, %v203_v18  ;;  %s614_s24 = scalar_lea.vmem %s681_s2, %s494_s21 }
  0x13   : > { %231 = vperm.xlu1 %521, %v206_v1   ;;  %223 = vperm.xlu0 %520, %v204_v2   ;;  %v205_v4 = vld [vmem:[%s587_s16 + $0x8] sm:$0xff]  ;;  %v208_v6 = vld [vmem:[%s587_s16 + $0x20] sm:$0xff]  ;;  %v211_v7 = vld [vmem:[%s587_s16 + $0x38] sm:$0xff] }
  0x14   : > { %v209_v5 = vld [vmem:[%s587_s16 + $0x28] sm:$0xff]  ;;  %v210_v8 = vld [vmem:[%s587_s16 + $0x30] sm:$0xff]  ;;  %v212_v10 = vld [vmem:[%s587_s16 + $0x40] sm:$0xff] }
  0x15   : > { %v213_v9 = vld [vmem:[%s587_s16 + $0x48] sm:$0xff]  ;;  %v215_v11 = vld [vmem:[%s587_s16 + $0x58] sm:$0xff]  ;;  %v214_v12 = vld [vmem:[%s587_s16 + $0x50] sm:$0xff] }
  0x16   : > { %v217_v13 = vld [vmem:[%s587_s16 + $0x68] sm:$0xff]  ;;  %v216_v14 = vld [vmem:[%s587_s16 + $0x60] sm:$0xff]  ;;  %v219_v15 = vld [vmem:[%s587_s16 + $0x78] sm:$0xff] }
  0x17   : > { %235 = vperm.xlu1 %521, %v207_v3   ;;  %227 = vperm.xlu0 %520, %v205_v4   ;;  %v218_v16 = vld [vmem:[%s587_s16 + $0x70] sm:$0xff]  ;;  %v220_v17 = vld [vmem:[%s587_s16 + $0x80] sm:$0xff] }
  0x1b   : > { %243 = vperm.xlu1 %521, %v209_v5   ;;  %239 = vperm.xlu0 %520, %v208_v6  }
  0x1f   : > { %251 = vperm.xlu1 %521, %v211_v7   ;;  %247 = vperm.xlu0 %520, %v210_v8  }
  0x23   : > { %259 = vperm.xlu1 %521, %v213_v9   ;;  %255 = vperm.xlu0 %520, %v212_v10  }
  0x27   : > { %267 = vperm.xlu1 %521, %v215_v11   ;;  %263 = vperm.xlu0 %520, %v214_v12  }
  0x2b   : > { %275 = vperm.xlu1 %521, %v217_v13   ;;  %271 = vperm.xlu0 %520, %v216_v14  }
  0x2f   : > { %283 = vperm.xlu1 %521, %v219_v15   ;;  %279 = vperm.xlu0 %520, %v218_v16  }
  0x33   : > { %287 = vperm.xlu0 %520, %v220_v17  }
  0x92   : > { %v232_v20 = vpop.permute.xlu1 %231  ;;  %v224_v21 = vpop.permute.xlu0 %223 }
  0x93   : > { %v293_v22 = vrot.slane %v224_v21, 5  ;;  %v296_v23 = vrot.slane %v232_v20, 5 }
  0x95   : > { %v344_v24 = vsel %vm292_vm0, %v203_v18, %v293_v22  ;;  %v345_v25 = vsel %vm292_vm0, %v290_v19, %v293_v22 }
  0x96   : > { %346 = vst [vmem:[%s614_s24] sm:$0xff] %v344_v24  ;;  %347 = vst [vmem:[%s614_s24 + $0x8] sm:$0xff] %v345_v25  ;;  %v236_v26 = vpop.permute.xlu1 %235  ;;  %v228_v27 = vpop.permute.xlu0 %227 }
  0x97   : > { %v298_v28 = vrot.slane %v236_v26, 5  ;;  %v294_v29 = vrot.slane %v228_v27, 5 }
  0x99   : > { %v299_v30 = vsel %vm292_vm0, %v296_v23, %v298_v28  ;;  %v295_v31 = vsel %vm292_vm0, %v293_v22, %v294_v29  ;;  %v297_v32 = vsel %vm292_vm0, %v294_v29, %v296_v23 }
  0x9a   : > { %352 = vst [vmem:[%s614_s24 + $0x30] sm:$0xff] %v299_v30  ;;  %353 = vst [vmem:[%s614_s24 + $0x38] sm:$0xff] %v299_v30  ;;  %v244_v33 = vpop.permute.xlu1 %243  ;;  %v240_v34 = vpop.permute.xlu0 %239 }
  0x9b   : > { %348 = vst [vmem:[%s614_s24 + $0x10] sm:$0xff] %v295_v31  ;;  %349 = vst [vmem:[%s614_s24 + $0x18] sm:$0xff] %v295_v31  ;;  %v302_v35 = vrot.slane %v244_v33, 5  ;;  %v300_v36 = vrot.slane %v240_v34, 5 }
  0x9c   : > { %350 = vst [vmem:[%s614_s24 + $0x20] sm:$0xff] %v297_v32  ;;  %351 = vst [vmem:[%s614_s24 + $0x28] sm:$0xff] %v297_v32 }
  0x9d   : > { %v301_v37 = vsel %vm292_vm0, %v298_v28, %v300_v36  ;;  %v303_v38 = vsel %vm292_vm0, %v300_v36, %v302_v35 }
  0x9e   : > { %354 = vst [vmem:[%s614_s24 + $0x40] sm:$0xff] %v301_v37  ;;  %355 = vst [vmem:[%s614_s24 + $0x48] sm:$0xff] %v301_v37  ;;  %v252_v39 = vpop.permute.xlu1 %251  ;;  %v248_v40 = vpop.permute.xlu0 %247 }
  0x9f   : > { %356 = vst [vmem:[%s614_s24 + $0x50] sm:$0xff] %v303_v38  ;;  %357 = vst [vmem:[%s614_s24 + $0x58] sm:$0xff] %v303_v38  ;;  %v306_v41 = vrot.slane %v252_v39, 5  ;;  %v304_v42 = vrot.slane %v248_v40, 5 }
  0xa1   : > { %v305_v43 = vsel %vm292_vm0, %v302_v35, %v304_v42  ;;  %v307_v44 = vsel %vm292_vm0, %v304_v42, %v306_v41 }
  0xa2   : > { %358 = vst [vmem:[%s614_s24 + $0x60] sm:$0xff] %v305_v43  ;;  %359 = vst [vmem:[%s614_s24 + $0x68] sm:$0xff] %v305_v43  ;;  %v260_v45 = vpop.permute.xlu1 %259  ;;  %v256_v46 = vpop.permute.xlu0 %255 }
  0xa3   : > { %360 = vst [vmem:[%s614_s24 + $0x70] sm:$0xff] %v307_v44  ;;  %361 = vst [vmem:[%s614_s24 + $0x78] sm:$0xff] %v307_v44  ;;  %v310_v47 = vrot.slane %v260_v45, 5  ;;  %v308_v48 = vrot.slane %v256_v46, 5 }
  0xa5   : > { %v309_v49 = vsel %vm292_vm0, %v306_v41, %v308_v48  ;;  %v311_v50 = vsel %vm292_vm0, %v308_v48, %v310_v47 }
  0xa6   : > { %362 = vst [vmem:[%s614_s24 + $0x80] sm:$0xff] %v309_v49  ;;  %363 = vst [vmem:[%s614_s24 + $0x88] sm:$0xff] %v309_v49  ;;  %v268_v51 = vpop.permute.xlu1 %267  ;;  %v264_v52 = vpop.permute.xlu0 %263 }
  0xa7   : > { %364 = vst [vmem:[%s614_s24 + $0x90] sm:$0xff] %v311_v50  ;;  %365 = vst [vmem:[%s614_s24 + $0x98] sm:$0xff] %v311_v50  ;;  %v314_v53 = vrot.slane %v268_v51, 5  ;;  %v312_v54 = vrot.slane %v264_v52, 5 }
  0xa9   : > { %v313_v55 = vsel %vm292_vm0, %v310_v47, %v312_v54  ;;  %v315_v56 = vsel %vm292_vm0, %v312_v54, %v314_v53 }
  0xaa   : > { %366 = vst [vmem:[%s614_s24 + $0xa0] sm:$0xff] %v313_v55  ;;  %367 = vst [vmem:[%s614_s24 + $0xa8] sm:$0xff] %v313_v55  ;;  %v276_v57 = vpop.permute.xlu1 %275  ;;  %v272_v58 = vpop.permute.xlu0 %271 }
  0xab   : > { %368 = vst [vmem:[%s614_s24 + $0xb0] sm:$0xff] %v315_v56  ;;  %369 = vst [vmem:[%s614_s24 + $0xb8] sm:$0xff] %v315_v56  ;;  %v318_v59 = vrot.slane %v276_v57, 5  ;;  %v316_v60 = vrot.slane %v272_v58, 5 }
  0xad   : > { %v317_v61 = vsel %vm292_vm0, %v314_v53, %v316_v60  ;;  %v319_v62 = vsel %vm292_vm0, %v316_v60, %v318_v59 }
  0xae   : > { %370 = vst [vmem:[%s614_s24 + $0xc0] sm:$0xff] %v317_v61  ;;  %371 = vst [vmem:[%s614_s24 + $0xc8] sm:$0xff] %v317_v61  ;;  %v284_v63 = vpop.permute.xlu1 %283  ;;  %v280_v0 = vpop.permute.xlu0 %279 }
  0xaf   : > { %372 = vst [vmem:[%s614_s24 + $0xd0] sm:$0xff] %v319_v62  ;;  %373 = vst [vmem:[%s614_s24 + $0xd8] sm:$0xff] %v319_v62  ;;  %v322_v1 = vrot.slane %v284_v63, 5  ;;  %v320_v2 = vrot.slane %v280_v0, 5 }
  0xb1   : > { %v321_v3 = vsel %vm292_vm0, %v318_v59, %v320_v2  ;;  %v323_v4 = vsel %vm292_vm0, %v320_v2, %v322_v1 }
  0xb2   : > { %374 = vst [vmem:[%s614_s24 + $0xe0] sm:$0xff] %v321_v3  ;;  %375 = vst [vmem:[%s614_s24 + $0xe8] sm:$0xff] %v321_v3  ;;  %v288_v5 = vpop.permute.xlu0 %287 }
  0xb3   : > { %376 = vst [vmem:[%s614_s24 + $0xf0] sm:$0xff] %v323_v4  ;;  %377 = vst [vmem:[%s614_s24 + $0xf8] sm:$0xff] %v323_v4  ;;  %v324_v6 = vrot.slane %v288_v5, 5 }
  0xb5   : > { %v325_v7 = vsel %vm292_vm0, %v322_v1, %v324_v6  ;;  %380 = vst [vmem:[%s614_s24 + $0x110] sm:$0x7] %v324_v6  ;;  %381 = vst [vmem:[%s614_s24 + $0x118] sm:$0x7] %v324_v6 }
  0xb6   : > { %378 = vst [vmem:[%s614_s24 + $0x100] sm:$0xff] %v325_v7  ;;  %379 = vst [vmem:[%s614_s24 + $0x108] sm:$0xff] %v325_v7 }
  0xb7 PF: > { %s12_s11 = sadd.s32 1, %s545_s11   ;;  %s682_s9 = smov %s541_s10 }
  0xb8   : > { %p9_p5 = scmp.ge.s32.totalorder %s12_s11, 4   ;;  %s683_s10 = smov %s685_s12 }
  0xba   :  { %11 = sbr.rel (!%p9_p5) target bundleno = 2 (0x2), region = 61 }

</bundles_post_ra>
